<compile_context>
chip_gen: v5e
topology: v5e:2x2
jax: 0.10.0
libtpu: 0.0.40
codegen_flags: <defaults>
</compile_context>

<pallas_src>
import jax
import jax.numpy as jnp
from jax import lax
from jax.experimental import pallas as pl
from jax.experimental.pallas import tpu as pltpu
import numpy as np


def lstm_tagger_kernel(embeds_ref,   # VMEM (seq, E)
                       w_ih_ref,     # VMEM (E, 4H)
                       w_hh_ref,     # VMEM (H, 4H)
                       b_ref,        # VMEM (1, 4H)  (b_ih + b_hh)
                       w_tag_ref,    # VMEM (H, T)
                       b_tag_ref,    # VMEM (1, T)
                       out_ref):     # VMEM (seq, T)
    seq_len = out_ref.shape[0]
    H = w_hh_ref.shape[0]

    # --- non-recurrent prologue: batched input projection (one MXU matmul, bias folded in) ---
    xw = (jnp.dot(embeds_ref[...], w_ih_ref[...],
                  preferred_element_type=jnp.float32)
          + b_ref[...])                                            # (seq, 4H), register-resident

    # Hoist the recurrent weight load out of the loop (one vld instead of seq_len).
    w_hh = w_hh_ref[...]                                           # (H, 4H)

    # self.hidden = init_hidden() -> zeros; carried as values (vregs), not VMEM refs.
    h = jnp.zeros((1, H), jnp.float32)
    c = jnp.zeros((1, H), jnp.float32)

    # --- serial recurrence: only h @ W_hh^T + gate nonlinearities on the critical path ---
    # Static Python loop: seq is small and static; fully unrolled with concrete indices.
    hs_rows = []
    for t in range(seq_len):
        gates = (xw[t:t + 1, :]
                 + jnp.dot(h, w_hh, preferred_element_type=jnp.float32))   # (1, 4H)

        # Two full-width EUP passes over the whole 4H row, then cheap lane slices.
        sig = jax.nn.sigmoid(gates)                                # i, f, o come from here
        tnh = jnp.tanh(gates)                                      # g comes from here
        i_g = sig[:, 0 * H:1 * H]
        f_g = sig[:, 1 * H:2 * H]
        g_g = tnh[:, 2 * H:3 * H]
        o_g = sig[:, 3 * H:4 * H]

        c = f_g * c + i_g * g_g
        h = o_g * jnp.tanh(c)
        hs_rows.append(h)

    hs = jnp.concatenate(hs_rows, axis=0)                          # (seq, H), register-resident

    # --- non-recurrent epilogue: batched hidden2tag + log_softmax(dim=1), single store ---
    logits = (jnp.dot(hs, w_tag_ref[...],
                      preferred_element_type=jnp.float32)
              + b_tag_ref[...])                                    # (seq, T)
    m = jnp.max(logits, axis=1, keepdims=True)
    z = logits - m
    out_ref[...] = z - jnp.log(jnp.sum(jnp.exp(z), axis=1, keepdims=True))


def lstm_tagger_forward(sentence, emb, w_ih, w_hh, b_ih, b_hh, w_tag, b_tag):
    """sentence: (seq,) int32. Returns (seq, tagset_size) float32 log-probs."""
    seq = sentence.shape[0]
    H = w_hh.shape[1]          # w_hh is (4H, H) -> hidden size
    T = w_tag.shape[0]

    # glue: embedding gather in the wrapper (keeps vocab table out of VMEM, no in-kernel
    # dynamic gather), pre-transpose weights, fold the two LSTM biases together.
    embeds = jnp.asarray(emb, jnp.float32)[sentence.astype(jnp.int32)]   # (seq, E)
    w_ih_t = jnp.asarray(w_ih, jnp.float32).T                            # (E, 4H)
    w_hh_t = jnp.asarray(w_hh, jnp.float32).T                            # (H, 4H)
    b = (jnp.asarray(b_ih, jnp.float32)
         + jnp.asarray(b_hh, jnp.float32)).reshape(1, 4 * H)             # (1, 4H)
    w_tag_t = jnp.asarray(w_tag, jnp.float32).T                          # (H, T)
    b_tag_r = jnp.asarray(b_tag, jnp.float32).reshape(1, T)              # (1, T)

    return pl.pallas_call(
        lstm_tagger_kernel,
        out_shape=jax.ShapeDtypeStruct((seq, T), jnp.float32),
        in_specs=[
            pl.BlockSpec(memory_space=pltpu.MemorySpace.VMEM),   # embeds
            pl.BlockSpec(memory_space=pltpu.MemorySpace.VMEM),   # W_ih^T
            pl.BlockSpec(memory_space=pltpu.MemorySpace.VMEM),   # W_hh^T
            pl.BlockSpec(memory_space=pltpu.MemorySpace.VMEM),   # bias
            pl.BlockSpec(memory_space=pltpu.MemorySpace.VMEM),   # W_tag^T
            pl.BlockSpec(memory_space=pltpu.MemorySpace.VMEM),   # b_tag
        ],
        out_specs=pl.BlockSpec(memory_space=pltpu.MemorySpace.VMEM),
    )(embeds, w_ih_t, w_hh_t, b, w_tag_t, b_tag_r)


def lstm_tagger_reference(sentence, emb, w_ih, w_hh, b_ih, b_hh, w_tag, b_tag):
    """Pure-JAX reference matching torch.nn.LSTM semantics (gate order i,f,g,o)."""
    H = w_hh.shape[1]
    embeds = emb[sentence]                                   # (seq, E)
    h = jnp.zeros((H,), jnp.float32)
    c = jnp.zeros((H,), jnp.float32)

    def step(carry, x_t):
        h, c = carry
        gates = w_ih @ x_t + b_ih + w_hh @ h + b_hh
        i = jax.nn.sigmoid(gates[0 * H:1 * H])
        f = jax.nn.sigmoid(gates[1 * H:2 * H])
        g = jnp.tanh(gates[2 * H:3 * H])
        o = jax.nn.sigmoid(gates[3 * H:4 * H])
        c = f * c + i * g
        h = o * jnp.tanh(c)
        return (h, c), h

    (_, _), hs = lax.scan(step, (h, c), embeds)              # (seq, H)
    logits = hs @ w_tag.T + b_tag                            # (seq, T)
    return jax.nn.log_softmax(logits, axis=1)


if __name__ == "__main__":
    # Small shapes consistent with the module's forward (batch=1, squeezed).
    seq_len = 8
    embedding_dim = 32
    hidden_dim = 32
    vocab_size = 16
    tagset_size = 8

    key = jax.random.PRNGKey(0)
    ks = jax.random.split(key, 8)
    s = 1.0 / np.sqrt(hidden_dim)

    sentence = jax.random.randint(ks[0], (seq_len,), 0, vocab_size, dtype=jnp.int32)
    emb = jax.random.normal(ks[1], (vocab_size, embedding_dim), jnp.float32)
    w_ih = jax.random.uniform(ks[2], (4 * hidden_dim, embedding_dim), jnp.float32, -s, s)
    w_hh = jax.random.uniform(ks[3], (4 * hidden_dim, hidden_dim), jnp.float32, -s, s)
    b_ih = jax.random.uniform(ks[4], (4 * hidden_dim,), jnp.float32, -s, s)
    b_hh = jax.random.uniform(ks[5], (4 * hidden_dim,), jnp.float32, -s, s)
    w_tag = jax.random.uniform(ks[6], (tagset_size, hidden_dim), jnp.float32, -s, s)
    b_tag = jax.random.uniform(ks[7], (tagset_size,), jnp.float32, -s, s)

    out = lstm_tagger_forward(sentence, emb, w_ih, w_hh, b_ih, b_hh, w_tag, b_tag)
    out = jax.block_until_ready(out)

    ref = lstm_tagger_reference(sentence, emb, w_ih, w_hh, b_ih, b_hh, w_tag, b_tag)
    ref = jax.block_until_ready(ref)

    np.testing.assert_allclose(np.asarray(out), np.asarray(ref), rtol=1e-4, atol=1e-4)
    print("KERNEL_OK")
</pallas_src>

<mosaic_0001>
module attributes {stable_mosaic.version = 11 : i64} {
  func.func @lstm_tagger_kernel(%arg0: memref<8x32xf32, #tpu.memory_space<vmem>>, %arg1: memref<32x128xf32, #tpu.memory_space<vmem>>, %arg2: memref<32x128xf32, #tpu.memory_space<vmem>>, %arg3: memref<1x128xf32, #tpu.memory_space<vmem>>, %arg4: memref<32x8xf32, #tpu.memory_space<vmem>>, %arg5: memref<1x8xf32, #tpu.memory_space<vmem>>, %arg6: memref<8x8xf32, #tpu.memory_space<vmem>>) attributes {dimension_semantics = [], scalar_prefetch = 0 : i64, scratch_operands = 0 : i64, tpu.core_type = #tpu.core_type<tc>} {
    %c0 = arith.constant 0 : index
    %c0_0 = arith.constant 0 : index
    %0 = vector.load %arg0[%c0, %c0_0] : memref<8x32xf32, #tpu.memory_space<vmem>>, vector<8x32xf32>
    %c0_1 = arith.constant 0 : index
    %c0_2 = arith.constant 0 : index
    %1 = vector.load %arg1[%c0_1, %c0_2] : memref<32x128xf32, #tpu.memory_space<vmem>>, vector<32x128xf32>
    %cst = arith.constant dense<0.000000e+00> : vector<8x128xf32>
    %2 = tpu.matmul %0, %1, %cst {dimension_numbers = #tpu.dot_dimension_numbers<[1], [0], [0], [1], [0, 0, 1, 1], [], []>} : vector<8x32xf32>, vector<32x128xf32>, vector<8x128xf32> -> vector<8x128xf32>
    %c0_3 = arith.constant 0 : index
    %c0_4 = arith.constant 0 : index
    %3 = vector.load %arg3[%c0_3, %c0_4] : memref<1x128xf32, #tpu.memory_space<vmem>>, vector<1x128xf32>
    %4 = vector.broadcast %3 : vector<1x128xf32> to vector<8x128xf32>
    %5 = arith.addf %2, %4 : vector<8x128xf32>
    %c0_5 = arith.constant 0 : index
    %c0_6 = arith.constant 0 : index
    %6 = vector.load %arg2[%c0_5, %c0_6] : memref<32x128xf32, #tpu.memory_space<vmem>>, vector<32x128xf32>
    %cst_7 = arith.constant 0.000000e+00 : f32
    %7 = vector.broadcast %cst_7 : f32 to vector<1x32xf32>
    %cst_8 = arith.constant 0.000000e+00 : f32
    %8 = vector.broadcast %cst_8 : f32 to vector<1x32xf32>
    %9 = vector.extract_strided_slice %5 {offsets = [0, 0], sizes = [1, 128], strides = [1, 1]} : vector<8x128xf32> to vector<1x128xf32>
    %cst_9 = arith.constant dense<0.000000e+00> : vector<1x128xf32>
    %10 = tpu.matmul %7, %6, %cst_9 {dimension_numbers = #tpu.dot_dimension_numbers<[1], [0], [0], [1], [0, 0, 1, 1], [], []>} : vector<1x32xf32>, vector<32x128xf32>, vector<1x128xf32> -> vector<1x128xf32>
    %11 = arith.addf %9, %10 : vector<1x128xf32>
    %12 = arith.negf %11 : vector<1x128xf32>
    %13 = math.exp %12 : vector<1x128xf32>
    %cst_10 = arith.constant 1.000000e+00 : f32
    %14 = vector.broadcast %cst_10 : f32 to vector<1x128xf32>
    %15 = arith.addf %14, %13 : vector<1x128xf32>
    %16 = arith.divf %14, %15 : vector<1x128xf32>
    %17 = math.tanh %11 : vector<1x128xf32>
    %18 = vector.extract_strided_slice %16 {offsets = [0, 0], sizes = [1, 32], strides = [1, 1]} : vector<1x128xf32> to vector<1x32xf32>
    %19 = vector.extract_strided_slice %16 {offsets = [0, 32], sizes = [1, 32], strides = [1, 1]} : vector<1x128xf32> to vector<1x32xf32>
    %20 = vector.extract_strided_slice %17 {offsets = [0, 64], sizes = [1, 32], strides = [1, 1]} : vector<1x128xf32> to vector<1x32xf32>
    %21 = vector.extract_strided_slice %16 {offsets = [0, 96], sizes = [1, 32], strides = [1, 1]} : vector<1x128xf32> to vector<1x32xf32>
    %22 = arith.mulf %19, %8 : vector<1x32xf32>
    %23 = arith.mulf %18, %20 : vector<1x32xf32>
    %24 = arith.addf %22, %23 : vector<1x32xf32>
    %25 = math.tanh %24 : vector<1x32xf32>
    %26 = arith.mulf %21, %25 : vector<1x32xf32>
    %27 = vector.extract_strided_slice %5 {offsets = [1, 0], sizes = [1, 128], strides = [1, 1]} : vector<8x128xf32> to vector<1x128xf32>
    %cst_11 = arith.constant dense<0.000000e+00> : vector<1x128xf32>
    %28 = tpu.matmul %26, %6, %cst_11 {dimension_numbers = #tpu.dot_dimension_numbers<[1], [0], [0], [1], [0, 0, 1, 1], [], []>} : vector<1x32xf32>, vector<32x128xf32>, vector<1x128xf32> -> vector<1x128xf32>
    %29 = arith.addf %27, %28 : vector<1x128xf32>
    %30 = arith.negf %29 : vector<1x128xf32>
    %31 = math.exp %30 : vector<1x128xf32>
    %cst_12 = arith.constant 1.000000e+00 : f32
    %32 = vector.broadcast %cst_12 : f32 to vector<1x128xf32>
    %33 = arith.addf %32, %31 : vector<1x128xf32>
    %34 = arith.divf %32, %33 : vector<1x128xf32>
    %35 = math.tanh %29 : vector<1x128xf32>
    %36 = vector.extract_strided_slice %34 {offsets = [0, 0], sizes = [1, 32], strides = [1, 1]} : vector<1x128xf32> to vector<1x32xf32>
    %37 = vector.extract_strided_slice %34 {offsets = [0, 32], sizes = [1, 32], strides = [1, 1]} : vector<1x128xf32> to vector<1x32xf32>
    %38 = vector.extract_strided_slice %35 {offsets = [0, 64], sizes = [1, 32], strides = [1, 1]} : vector<1x128xf32> to vector<1x32xf32>
    %39 = vector.extract_strided_slice %34 {offsets = [0, 96], sizes = [1, 32], strides = [1, 1]} : vector<1x128xf32> to vector<1x32xf32>
    %40 = arith.mulf %37, %24 : vector<1x32xf32>
    %41 = arith.mulf %36, %38 : vector<1x32xf32>
    %42 = arith.addf %40, %41 : vector<1x32xf32>
    %43 = math.tanh %42 : vector<1x32xf32>
    %44 = arith.mulf %39, %43 : vector<1x32xf32>
    %45 = vector.extract_strided_slice %5 {offsets = [2, 0], sizes = [1, 128], strides = [1, 1]} : vector<8x128xf32> to vector<1x128xf32>
    %cst_13 = arith.constant dense<0.000000e+00> : vector<1x128xf32>
    %46 = tpu.matmul %44, %6, %cst_13 {dimension_numbers = #tpu.dot_dimension_numbers<[1], [0], [0], [1], [0, 0, 1, 1], [], []>} : vector<1x32xf32>, vector<32x128xf32>, vector<1x128xf32> -> vector<1x128xf32>
    %47 = arith.addf %45, %46 : vector<1x128xf32>
    %48 = arith.negf %47 : vector<1x128xf32>
    %49 = math.exp %48 : vector<1x128xf32>
    %cst_14 = arith.constant 1.000000e+00 : f32
    %50 = vector.broadcast %cst_14 : f32 to vector<1x128xf32>
    %51 = arith.addf %50, %49 : vector<1x128xf32>
    %52 = arith.divf %50, %51 : vector<1x128xf32>
    %53 = math.tanh %47 : vector<1x128xf32>
    %54 = vector.extract_strided_slice %52 {offsets = [0, 0], sizes = [1, 32], strides = [1, 1]} : vector<1x128xf32> to vector<1x32xf32>
    %55 = vector.extract_strided_slice %52 {offsets = [0, 32], sizes = [1, 32], strides = [1, 1]} : vector<1x128xf32> to vector<1x32xf32>
    %56 = vector.extract_strided_slice %53 {offsets = [0, 64], sizes = [1, 32], strides = [1, 1]} : vector<1x128xf32> to vector<1x32xf32>
    %57 = vector.extract_strided_slice %52 {offsets = [0, 96], sizes = [1, 32], strides = [1, 1]} : vector<1x128xf32> to vector<1x32xf32>
    %58 = arith.mulf %55, %42 : vector<1x32xf32>
    %59 = arith.mulf %54, %56 : vector<1x32xf32>
    %60 = arith.addf %58, %59 : vector<1x32xf32>
    %61 = math.tanh %60 : vector<1x32xf32>
    %62 = arith.mulf %57, %61 : vector<1x32xf32>
    %63 = vector.extract_strided_slice %5 {offsets = [3, 0], sizes = [1, 128], strides = [1, 1]} : vector<8x128xf32> to vector<1x128xf32>
    %cst_15 = arith.constant dense<0.000000e+00> : vector<1x128xf32>
    %64 = tpu.matmul %62, %6, %cst_15 {dimension_numbers = #tpu.dot_dimension_numbers<[1], [0], [0], [1], [0, 0, 1, 1], [], []>} : vector<1x32xf32>, vector<32x128xf32>, vector<1x128xf32> -> vector<1x128xf32>
    %65 = arith.addf %63, %64 : vector<1x128xf32>
    %66 = arith.negf %65 : vector<1x128xf32>
    %67 = math.exp %66 : vector<1x128xf32>
    %cst_16 = arith.constant 1.000000e+00 : f32
    %68 = vector.broadcast %cst_16 : f32 to vector<1x128xf32>
    %69 = arith.addf %68, %67 : vector<1x128xf32>
    %70 = arith.divf %68, %69 : vector<1x128xf32>
    %71 = math.tanh %65 : vector<1x128xf32>
    %72 = vector.extract_strided_slice %70 {offsets = [0, 0], sizes = [1, 32], strides = [1, 1]} : vector<1x128xf32> to vector<1x32xf32>
    %73 = vector.extract_strided_slice %70 {offsets = [0, 32], sizes = [1, 32], strides = [1, 1]} : vector<1x128xf32> to vector<1x32xf32>
    %74 = vector.extract_strided_slice %71 {offsets = [0, 64], sizes = [1, 32], strides = [1, 1]} : vector<1x128xf32> to vector<1x32xf32>
    %75 = vector.extract_strided_slice %70 {offsets = [0, 96], sizes = [1, 32], strides = [1, 1]} : vector<1x128xf32> to vector<1x32xf32>
    %76 = arith.mulf %73, %60 : vector<1x32xf32>
    %77 = arith.mulf %72, %74 : vector<1x32xf32>
    %78 = arith.addf %76, %77 : vector<1x32xf32>
    %79 = math.tanh %78 : vector<1x32xf32>
    %80 = arith.mulf %75, %79 : vector<1x32xf32>
    %81 = vector.extract_strided_slice %5 {offsets = [4, 0], sizes = [1, 128], strides = [1, 1]} : vector<8x128xf32> to vector<1x128xf32>
    %cst_17 = arith.constant dense<0.000000e+00> : vector<1x128xf32>
    %82 = tpu.matmul %80, %6, %cst_17 {dimension_numbers = #tpu.dot_dimension_numbers<[1], [0], [0], [1], [0, 0, 1, 1], [], []>} : vector<1x32xf32>, vector<32x128xf32>, vector<1x128xf32> -> vector<1x128xf32>
    %83 = arith.addf %81, %82 : vector<1x128xf32>
    %84 = arith.negf %83 : vector<1x128xf32>
    %85 = math.exp %84 : vector<1x128xf32>
    %cst_18 = arith.constant 1.000000e+00 : f32
    %86 = vector.broadcast %cst_18 : f32 to vector<1x128xf32>
    %87 = arith.addf %86, %85 : vector<1x128xf32>
    %88 = arith.divf %86, %87 : vector<1x128xf32>
    %89 = math.tanh %83 : vector<1x128xf32>
    %90 = vector.extract_strided_slice %88 {offsets = [0, 0], sizes = [1, 32], strides = [1, 1]} : vector<1x128xf32> to vector<1x32xf32>
    %91 = vector.extract_strided_slice %88 {offsets = [0, 32], sizes = [1, 32], strides = [1, 1]} : vector<1x128xf32> to vector<1x32xf32>
    %92 = vector.extract_strided_slice %89 {offsets = [0, 64], sizes = [1, 32], strides = [1, 1]} : vector<1x128xf32> to vector<1x32xf32>
    %93 = vector.extract_strided_slice %88 {offsets = [0, 96], sizes = [1, 32], strides = [1, 1]} : vector<1x128xf32> to vector<1x32xf32>
    %94 = arith.mulf %91, %78 : vector<1x32xf32>
    %95 = arith.mulf %90, %92 : vector<1x32xf32>
    %96 = arith.addf %94, %95 : vector<1x32xf32>
    %97 = math.tanh %96 : vector<1x32xf32>
    %98 = arith.mulf %93, %97 : vector<1x32xf32>
    %99 = vector.extract_strided_slice %5 {offsets = [5, 0], sizes = [1, 128], strides = [1, 1]} : vector<8x128xf32> to vector<1x128xf32>
    %cst_19 = arith.constant dense<0.000000e+00> : vector<1x128xf32>
    %100 = tpu.matmul %98, %6, %cst_19 {dimension_numbers = #tpu.dot_dimension_numbers<[1], [0], [0], [1], [0, 0, 1, 1], [], []>} : vector<1x32xf32>, vector<32x128xf32>, vector<1x128xf32> -> vector<1x128xf32>
    %101 = arith.addf %99, %100 : vector<1x128xf32>
    %102 = arith.negf %101 : vector<1x128xf32>
    %103 = math.exp %102 : vector<1x128xf32>
    %cst_20 = arith.constant 1.000000e+00 : f32
    %104 = vector.broadcast %cst_20 : f32 to vector<1x128xf32>
    %105 = arith.addf %104, %103 : vector<1x128xf32>
    %106 = arith.divf %104, %105 : vector<1x128xf32>
    %107 = math.tanh %101 : vector<1x128xf32>
    %108 = vector.extract_strided_slice %106 {offsets = [0, 0], sizes = [1, 32], strides = [1, 1]} : vector<1x128xf32> to vector<1x32xf32>
    %109 = vector.extract_strided_slice %106 {offsets = [0, 32], sizes = [1, 32], strides = [1, 1]} : vector<1x128xf32> to vector<1x32xf32>
    %110 = vector.extract_strided_slice %107 {offsets = [0, 64], sizes = [1, 32], strides = [1, 1]} : vector<1x128xf32> to vector<1x32xf32>
    %111 = vector.extract_strided_slice %106 {offsets = [0, 96], sizes = [1, 32], strides = [1, 1]} : vector<1x128xf32> to vector<1x32xf32>
    %112 = arith.mulf %109, %96 : vector<1x32xf32>
    %113 = arith.mulf %108, %110 : vector<1x32xf32>
    %114 = arith.addf %112, %113 : vector<1x32xf32>
    %115 = math.tanh %114 : vector<1x32xf32>
    %116 = arith.mulf %111, %115 : vector<1x32xf32>
    %117 = vector.extract_strided_slice %5 {offsets = [6, 0], sizes = [1, 128], strides = [1, 1]} : vector<8x128xf32> to vector<1x128xf32>
    %cst_21 = arith.constant dense<0.000000e+00> : vector<1x128xf32>
    %118 = tpu.matmul %116, %6, %cst_21 {dimension_numbers = #tpu.dot_dimension_numbers<[1], [0], [0], [1], [0, 0, 1, 1], [], []>} : vector<1x32xf32>, vector<32x128xf32>, vector<1x128xf32> -> vector<1x128xf32>
    %119 = arith.addf %117, %118 : vector<1x128xf32>
    %120 = arith.negf %119 : vector<1x128xf32>
    %121 = math.exp %120 : vector<1x128xf32>
    %cst_22 = arith.constant 1.000000e+00 : f32
    %122 = vector.broadcast %cst_22 : f32 to vector<1x128xf32>
    %123 = arith.addf %122, %121 : vector<1x128xf32>
    %124 = arith.divf %122, %123 : vector<1x128xf32>
    %125 = math.tanh %119 : vector<1x128xf32>
    %126 = vector.extract_strided_slice %124 {offsets = [0, 0], sizes = [1, 32], strides = [1, 1]} : vector<1x128xf32> to vector<1x32xf32>
    %127 = vector.extract_strided_slice %124 {offsets = [0, 32], sizes = [1, 32], strides = [1, 1]} : vector<1x128xf32> to vector<1x32xf32>
    %128 = vector.extract_strided_slice %125 {offsets = [0, 64], sizes = [1, 32], strides = [1, 1]} : vector<1x128xf32> to vector<1x32xf32>
    %129 = vector.extract_strided_slice %124 {offsets = [0, 96], sizes = [1, 32], strides = [1, 1]} : vector<1x128xf32> to vector<1x32xf32>
    %130 = arith.mulf %127, %114 : vector<1x32xf32>
    %131 = arith.mulf %126, %128 : vector<1x32xf32>
    %132 = arith.addf %130, %131 : vector<1x32xf32>
    %133 = math.tanh %132 : vector<1x32xf32>
    %134 = arith.mulf %129, %133 : vector<1x32xf32>
    %135 = vector.extract_strided_slice %5 {offsets = [7, 0], sizes = [1, 128], strides = [1, 1]} : vector<8x128xf32> to vector<1x128xf32>
    %cst_23 = arith.constant dense<0.000000e+00> : vector<1x128xf32>
    %136 = tpu.matmul %134, %6, %cst_23 {dimension_numbers = #tpu.dot_dimension_numbers<[1], [0], [0], [1], [0, 0, 1, 1], [], []>} : vector<1x32xf32>, vector<32x128xf32>, vector<1x128xf32> -> vector<1x128xf32>
    %137 = arith.addf %135, %136 : vector<1x128xf32>
    %138 = arith.negf %137 : vector<1x128xf32>
    %139 = math.exp %138 : vector<1x128xf32>
    %cst_24 = arith.constant 1.000000e+00 : f32
    %140 = vector.broadcast %cst_24 : f32 to vector<1x128xf32>
    %141 = arith.addf %140, %139 : vector<1x128xf32>
    %142 = arith.divf %140, %141 : vector<1x128xf32>
    %143 = math.tanh %137 : vector<1x128xf32>
    %144 = vector.extract_strided_slice %142 {offsets = [0, 0], sizes = [1, 32], strides = [1, 1]} : vector<1x128xf32> to vector<1x32xf32>
    %145 = vector.extract_strided_slice %142 {offsets = [0, 32], sizes = [1, 32], strides = [1, 1]} : vector<1x128xf32> to vector<1x32xf32>
    %146 = vector.extract_strided_slice %143 {offsets = [0, 64], sizes = [1, 32], strides = [1, 1]} : vector<1x128xf32> to vector<1x32xf32>
    %147 = vector.extract_strided_slice %142 {offsets = [0, 96], sizes = [1, 32], strides = [1, 1]} : vector<1x128xf32> to vector<1x32xf32>
    %148 = arith.mulf %145, %132 : vector<1x32xf32>
    %149 = arith.mulf %144, %146 : vector<1x32xf32>
    %150 = arith.addf %148, %149 : vector<1x32xf32>
    %151 = math.tanh %150 : vector<1x32xf32>
    %152 = arith.mulf %147, %151 : vector<1x32xf32>
    %153 = tpu.concatenate %26, %44, %62, %80, %98, %116, %134, %152 in 0 : vector<1x32xf32>, vector<1x32xf32>, vector<1x32xf32>, vector<1x32xf32>, vector<1x32xf32>, vector<1x32xf32>, vector<1x32xf32>, vector<1x32xf32> -> vector<8x32xf32>
    %c0_25 = arith.constant 0 : index
    %c0_26 = arith.constant 0 : index
    %154 = vector.load %arg4[%c0_25, %c0_26] : memref<32x8xf32, #tpu.memory_space<vmem>>, vector<32x8xf32>
    %cst_27 = arith.constant dense<0.000000e+00> : vector<8x8xf32>
    %155 = tpu.matmul %153, %154, %cst_27 {dimension_numbers = #tpu.dot_dimension_numbers<[1], [0], [0], [1], [0, 0, 1, 1], [], []>} : vector<8x32xf32>, vector<32x8xf32>, vector<8x8xf32> -> vector<8x8xf32>
    %c0_28 = arith.constant 0 : index
    %c0_29 = arith.constant 0 : index
    %156 = vector.load %arg5[%c0_28, %c0_29] : memref<1x8xf32, #tpu.memory_space<vmem>>, vector<1x8xf32>
    %157 = vector.broadcast %156 : vector<1x8xf32> to vector<8x8xf32>
    %158 = arith.addf %155, %157 : vector<8x8xf32>
    %cst_30 = arith.constant dense<0xFF800000> : vector<8xf32>
    %159 = vector.multi_reduction <maximumf>, %158, %cst_30 [1] : vector<8x8xf32> to vector<8xf32>
    %160 = vector.shape_cast %159 : vector<8xf32> to vector<8x1xf32>
    %161 = vector.broadcast %160 : vector<8x1xf32> to vector<8x8xf32>
    %162 = arith.subf %158, %161 : vector<8x8xf32>
    %163 = math.exp %162 : vector<8x8xf32>
    %cst_31 = arith.constant dense<0.000000e+00> : vector<8xf32>
    %164 = vector.multi_reduction <add>, %163, %cst_31 [1] : vector<8x8xf32> to vector<8xf32>
    %165 = vector.shape_cast %164 : vector<8xf32> to vector<8x1xf32>
    %166 = math.log %165 : vector<8x1xf32>
    %167 = vector.broadcast %166 : vector<8x1xf32> to vector<8x8xf32>
    %168 = arith.subf %162, %167 : vector<8x8xf32>
    %c0_32 = arith.constant 0 : index
    %c0_33 = arith.constant 0 : index
    %169 = vector.load %arg6[%c0_32, %c0_33] : memref<8x8xf32, #tpu.memory_space<vmem>>, vector<8x8xf32>
    tpu.vector_store %arg6[%c0_32, %c0_33], %168 {strides = array<i32>} : memref<8x8xf32, #tpu.memory_space<vmem>>, vector<8x8xf32>,
    return
  }
}

</mosaic_0001>

<bundles_post_ra>
// kernel: tpu_custom_call.1
= control target key start
LH: loop header
LB: loop body
LE: loop exit
PB: predicated region body
PF: predicated region fallthrough
CT: control target
= control target key end

     0   :  { %11 = vsyncpa [#allocation3], 0  ;;  %s990_s0 = inlined_call_operand.vmem [shape: f32[8,32], index: 0, kind: input, shape index: {}]   ;;  %s991_s1 = inlined_call_operand.vmem [shape: f32[32,128], index: 1, kind: input, shape index: {}]   ;;  %s992_s2 = inlined_call_operand.hbm [shape: f32[32,128], index: 2, kind: input, shape index: {}]   ;;  %s993_s3 = inlined_call_operand.vmem [shape: f32[1,128], index: 3, kind: input, shape index: {}]   ;;  %s994_s4 = inlined_call_operand.vmem [shape: f32[32,8], index: 4, kind: input, shape index: {}]   ;;  %s995_s5 = inlined_call_operand.vmem [shape: f32[1,8], index: 5, kind: input, shape index: {}]   ;;  %s996_s6 = inlined_call_operand.hbm [shape: f32[8,8], index: 6, kind: output, shape index: {}]  }
   0x1   :  { %12 = vsyncpa [#allocation4], 0  ;;  %s21_s23 = sshll.u32 %s992_s2, 4  ;;  %s851_s24 = smov [#allocation2]   ;;  %s22_s23 = int_to_ptr.hbm [resolvable:$true] %s21_s23 }
   0x2   :  { %s23_s25 = sshll.u32 %s851_s24, 4  ;;  %s852_s26 = smov 128   ;;  %s24_s25 = int_to_ptr.vmem [resolvable:$true] %s23_s25 }
   0x3   :  { %s853_s27 = smov 8  }
   0x4   :  { %29 = dma.hbm_to_vmem [thread:$0]  %s22_s23, 512, %s24_s25, [#allocation3], %s852_s26, %s852_s26, %s853_s27  }
   0x5   :  { %847 = dma.done.wait [#allocation3], 512  }
   0x6   :  { %848 = vsyncadd [#allocation3], 4294966784  ;;  %v44_v0 = vld [vmem:[%s991_s1 + $0x18] sm:$0xff]  ;;  %v43_v1 = vld [vmem:[%s991_s1 + $0x10] sm:$0xff]  ;;  %vm49_vm0 = vcmask 261120   ;;  %v854_v9 = vmov 0.0  }
   0x7   :  { %v76_v2 = vld [vmem:[#allocation2 + $0x18] sm:$0xff]  ;;  %65 = vmatpush.msra.mxu0 %v44_v0  ;;  %v75_v3 = vld [vmem:[#allocation2 + $0x10] sm:$0xff]  ;;  %v42_v4 = vld [vmem:[%s991_s1 + $0x8] sm:$0xff]  ;;  %s855_s13 = smov 64   ;;  %vm627_vm13 = vcmask 1040384   ;;  %vm629_vm14 = vcmask 1041408  }
   0x8   :  { %92 = vmatpush.msra.mxu1 %v76_v2  ;;  %v74_v5 = vld [vmem:[#allocation2 + $0x8] sm:$0xff]  ;;  %155 = vmatpush.msra.mxu2 %v76_v2  ;;  %v41_v6 = vld [vmem:[%s991_s1] sm:$0xff]  ;;  %s695_s26 = sshll.u32 %s996_s6, 4  ;;  %s696_s26 = int_to_ptr.hbm [resolvable:$true] %s695_s26 }
   0x9   :  { %225 = vmatpush.msra.mxu3 %v76_v2  ;;  %66 = vmatpush.msra.mxu0 %v43_v1  ;;  %v73_v7 = vld [vmem:[#allocation2] sm:$0xff] }
   0xa   :  { %93 = vmatpush.msra.mxu1 %v75_v3  ;;  %156 = vmatpush.msra.mxu2 %v75_v3  ;;  %v40_v8 = vld [vmem:[%s990_s0] sm:$0xff] }
   0xb   :  { %226 = vmatpush.msra.mxu3 %v75_v3  ;;  %67 = vmatpush.msra.mxu0 %v42_v4  ;;  %v729_v10 = vld [vmem:[%s993_s3] ss:$0 sm:$0xff]  ;;  %s856_s3 = smov 32  }
   0xc   :  { %94 = vmatpush.msra.mxu1 %v74_v5  ;;  %157 = vmatpush.msra.mxu2 %v74_v5 }
   0xd   :  { %227 = vmatpush.msra.mxu3 %v74_v5  ;;  %68 = vmatpush.msra.mxu0 %v41_v6 }
   0xe   :  { %95 = vmatpush.msra.mxu1 %v73_v7  ;;  %705 = vmatmul.msk.f32.vlgmr.msra.gmra.mxu0 %vm49_vm0, %v40_v8 }
   0xf   :  { %96 = vmatmul.f32.vlgmr.msra.gmra.mxu1 %v854_v9  ;;  %158 = vmatpush.msra.mxu2 %v73_v7 }
  0x10   :  { %228 = vmatpush.msra.mxu3 %v73_v7  ;;  %295 = vmatpush.msrb.mxu0 %v76_v2 }
  0x11   :  { %365 = vmatpush.msrb.mxu1 %v76_v2  ;;  %435 = vmatpush.msrb.mxu2 %v76_v2 }
  0x12   :  { %505 = vmatpush.msrb.mxu3 %v76_v2  ;;  %296 = vmatpush.msrb.mxu0 %v75_v3 }
  0x13   :  { %366 = vmatpush.msrb.mxu1 %v75_v3  ;;  %436 = vmatpush.msrb.mxu2 %v75_v3 }
  0x14   :  { %506 = vmatpush.msrb.mxu3 %v75_v3  ;;  %297 = vmatpush.msrb.mxu0 %v74_v5 }
  0x15   :  { %367 = vmatpush.msrb.mxu1 %v74_v5  ;;  %437 = vmatpush.msrb.mxu2 %v74_v5 }
  0x16   :  { %507 = vmatpush.msrb.mxu3 %v74_v5  ;;  %298 = vmatpush.msrb.mxu0 %v73_v7 }
  0x17   :  { %368 = vmatpush.msrb.mxu1 %v73_v7  ;;  %438 = vmatpush.msrb.mxu2 %v73_v7 }
  0x18   :  { %508 = vmatpush.msrb.mxu3 %v73_v7  ;;  %575 = vmatpush.msra.mxu0 %v76_v2 }
  0x1a   :  { %576 = vmatpush.msra.mxu0 %v75_v3 }
  0x1c   :  { %577 = vmatpush.msra.mxu0 %v74_v5 }
  0x1e   :  { %578 = vmatpush.msra.mxu0 %v73_v7 }
  0x8b   :  { %v70_v11 = vpop.f32.mrf.mxu0 }
  0x8c   :  { %v97_v12 = vpop.f32.mrf.mxu1  ;;  %v915_v13 = vadd.f32 %v729_v10, %v70_v11 }
  0x8e   :  { %v100_v14 = vadd.f32 %v97_v12, %v915_v13 }
  0x90   :  { %731 = vtanh.f32 %v100_v14  ;;  %v706_v16 = vmul.f32 -1.442695, %v100_v14 }
  0x92   :  { %733 = vpow2.f32 %v706_v16 }
  0x96   :  { %v732_v15 = vpop.eup %731 }
  0x97   :  { %123 = vrot.lane.b32.xlu0 %v732_v15, %s855_s13 }
  0x98   :  { %v734_v17 = vpop.eup %733 }
  0x99   :  { %v104_v18 = vadd.f32 1.0, %v734_v17 }
  0x9b   :  { %735 = vrcp.f32 %v104_v18  ;;  %v116_v24 = vand.u32 2147483648, %v104_v18  ;;  %vm110_vm2 = vweird.f32 %v104_v18  ;;  %v114_v25 = vand.u32 2147483647, %v104_v18 }
  0x9d   :  { %v117_v27 = vor.u32 1.1754944e-38, %v116_v24  ;;  %vm115_vm4 = vcmp.eq.f32.partialorder %v114_v25, 8.507059e+37 }
  0xa1   :  { %v736_v19 = vpop.eup %735 }
  0xa2   :  { %v106_v20 = vmul.f32 %v736_v19, %v104_v18  ;;  %vm111_vm1 = vweird.f32 %v736_v19 }
  0xa3   :  { %vm112_vm3 = vmor %vm110_vm2, %vm111_vm1 }
  0xa4   :  { %v107_v21 = vsub.f32 1.0, %v106_v20 }
  0xa6   :  { %v108_v22 = vmul.f32 %v736_v19, %v107_v21 }
  0xa8   :  { %v109_v23 = vadd.f32 %v736_v19, %v108_v22 }
  0xaa   :  { %v113_v26 = vsel %vm112_vm3, %v736_v19, %v109_v23 }
  0xab   :  { %v118_v29 = vsel %vm115_vm4, %v117_v27, %v113_v26  ;;  %vm631_vm4 = vcmask 1042432  }
  0xac   :  { %v121_v31 = vmul.f32 0.0, %v118_v29 }
 0x109   :  { %v124_v28 = vpop.permute.xlu0 %123 }
 0x10a   :  { %v126_v30 = vmul.f32 %v124_v28, %v118_v29 }
 0x10c   :  { %128 = vrot.lane.b32.xlu0 %v126_v30, %s856_s3 }
 0x17e   :  { %v129_v32 = vpop.permute.xlu0 %128 }
 0x17f   :  { %v131_v33 = vadd.f32 %v129_v32, %v121_v31 }
 0x181   :  { %737 = vtanh.f32 %v131_v33  ;;  %v188_v57 = vrot.slane %v131_v33, 7 }
 0x187   :  { %v738_v34 = vpop.eup %737 }
 0x188   :  { %134 = vrot.lane.b32.xlu1 %v738_v34, %s855_s13 }
 0x1fa   :  { %v135_v35 = vpop.permute.xlu1 %134 }
 0x1fb   :  { %v921_v36 = vmul.f32 %v135_v35, %v118_v29 }
 0x1fd   :  { %139 = vrot.lane.b32.xlu1 %v921_v36, %s856_s3 }
 0x26f   :  { %v140_v37 = vpop.permute.xlu1 %139 }
 0x270   :  { %707 = vmatmul.msk.f32.vlgmr.msra.gmra.mxu2 %vm49_vm0, %v140_v37 }
 0x2f3   :  { %v160_v38 = vpop.f32.mrf.mxu2 }
 0x2f4   :  { %v164_v39 = vrot.slane %v160_v38, 7 }
 0x2f6   :  { %v166_v40 = vadd.f32 %v164_v39, %v915_v13 }
 0x2f8   :  { %739 = vtanh.f32 %v166_v40  ;;  %v708_v42 = vmul.f32 -1.442695, %v166_v40 }
 0x2fa   :  { %741 = vpow2.f32 %v708_v42 }
 0x2fe   :  { %v740_v41 = vpop.eup %739 }
 0x2ff   :  { %192 = vrot.lane.b32.xlu2 %v740_v41, %s855_s13 }
 0x300   :  { %v742_v43 = vpop.eup %741 }
 0x301   :  { %v170_v44 = vadd.f32 1.0, %v742_v43 }
 0x303   :  { %743 = vrcp.f32 %v170_v44  ;;  %v182_v50 = vand.u32 2147483648, %v170_v44  ;;  %vm176_vm6 = vweird.f32 %v170_v44  ;;  %v180_v51 = vand.u32 2147483647, %v170_v44 }
 0x305   :  { %v183_v53 = vor.u32 1.1754944e-38, %v182_v50  ;;  %vm181_vm8 = vcmp.eq.f32.partialorder %v180_v51, 8.507059e+37 }
 0x309   :  { %v744_v45 = vpop.eup %743 }
 0x30a   :  { %v172_v46 = vmul.f32 %v744_v45, %v170_v44  ;;  %vm177_vm5 = vweird.f32 %v744_v45 }
 0x30b   :  { %vm178_vm7 = vmor %vm176_vm6, %vm177_vm5 }
 0x30c   :  { %v173_v47 = vsub.f32 1.0, %v172_v46 }
 0x30e   :  { %v174_v48 = vmul.f32 %v744_v45, %v173_v47 }
 0x310   :  { %v175_v49 = vadd.f32 %v744_v45, %v174_v48 }
 0x312   :  { %v179_v52 = vsel %vm178_vm7, %v744_v45, %v175_v49 }
 0x313   :  { %v184_v55 = vsel %vm181_vm8, %v183_v53, %v179_v52 }
 0x314   :  { %v190_v58 = vmul.f32 %v188_v57, %v184_v55 }
 0x359   :  { %v193_v54 = vpop.permute.xlu2 %192 }
 0x35a   :  { %v195_v56 = vmul.f32 %v193_v54, %v184_v55 }
 0x35c   :  { %197 = vrot.lane.b32.xlu2 %v195_v56, %s856_s3 }
 0x3b6   :  { %v198_v59 = vpop.permute.xlu2 %197 }
 0x3b7   :  { %v200_v60 = vadd.f32 %v198_v59, %v190_v58 }
 0x3b9   :  { %745 = vtanh.f32 %v200_v60  ;;  %v258_v22 = vrot.slane %v200_v60, 7 }
 0x3bf   :  { %v746_v61 = vpop.eup %745 }
 0x3c0   :  { %203 = vrot.lane.b32.xlu0 %v746_v61, %s855_s13 }
 0x432   :  { %v204_v62 = vpop.permute.xlu0 %203 }
 0x433   :  { %v206_v63 = vmul.f32 %v204_v62, %v184_v55 }
 0x435   :  { %v208_v0 = vrot.slane %v206_v63, 1  ;;  %v628_v29 = vsel %vm627_vm13, %v921_v36, %v206_v63 }
 0x437   :  { %209 = vrot.lane.b32.xlu1 %v208_v0, %s856_s3 }
 0x4a9   :  { %v210_v1 = vpop.permute.xlu1 %209 }
 0x4aa   :  { %709 = vmatmul.msk.f32.vlgmr.msra.gmra.mxu3 %vm49_vm0, %v210_v1 }
 0x52d   :  { %v230_v2 = vpop.f32.mrf.mxu3 }
 0x52e   :  { %v234_v3 = vrot.slane %v230_v2, 6 }
 0x530   :  { %v236_v4 = vadd.f32 %v234_v3, %v915_v13 }
 0x532   :  { %747 = vtanh.f32 %v236_v4  ;;  %v710_v6 = vmul.f32 -1.442695, %v236_v4 }
 0x534   :  { %749 = vpow2.f32 %v710_v6 }
 0x538   :  { %v748_v5 = vpop.eup %747 }
 0x539   :  { %262 = vrot.lane.b32.xlu2 %v748_v5, %s855_s13 }
 0x53a   :  { %v750_v7 = vpop.eup %749 }
 0x53b   :  { %v240_v8 = vadd.f32 1.0, %v750_v7 }
 0x53d   :  { %751 = vrcp.f32 %v240_v8  ;;  %v252_v15 = vand.u32 2147483648, %v240_v8  ;;  %vm246_vm10 = vweird.f32 %v240_v8  ;;  %v250_v16 = vand.u32 2147483647, %v240_v8 }
 0x53f   :  { %v253_v18 = vor.u32 1.1754944e-38, %v252_v15  ;;  %vm251_vm12 = vcmp.eq.f32.partialorder %v250_v16, 8.507059e+37 }
 0x543   :  { %v752_v9 = vpop.eup %751 }
 0x544   :  { %v242_v10 = vmul.f32 %v752_v9, %v240_v8  ;;  %vm247_vm9 = vweird.f32 %v752_v9 }
 0x545   :  { %vm248_vm11 = vmor %vm246_vm10, %vm247_vm9  ;;  %vm633_vm9 = vcmask 1043456  }
 0x546   :  { %v243_v11 = vsub.f32 1.0, %v242_v10 }
 0x548   :  { %v244_v12 = vmul.f32 %v752_v9, %v243_v11 }
 0x54a   :  { %v245_v14 = vadd.f32 %v752_v9, %v244_v12 }
 0x54c   :  { %v249_v17 = vsel %vm248_vm11, %v752_v9, %v245_v14 }
 0x54d   :  { %v254_v20 = vsel %vm251_vm12, %v253_v18, %v249_v17 }
 0x54e   :  { %v260_v23 = vmul.f32 %v258_v22, %v254_v20 }
 0x593   :  { %v263_v19 = vpop.permute.xlu2 %262 }
 0x594   :  { %v265_v21 = vmul.f32 %v263_v19, %v254_v20 }
 0x596   :  { %267 = vrot.lane.b32.xlu0 %v265_v21, %s856_s3 }
 0x608   :  { %v268_v24 = vpop.permute.xlu0 %267 }
 0x609   :  { %v270_v25 = vadd.f32 %v268_v24, %v260_v23 }
 0x60b   :  { %753 = vtanh.f32 %v270_v25  ;;  %v328_v52 = vrot.slane %v270_v25, 7 }
 0x611   :  { %v754_v26 = vpop.eup %753 }
 0x612   :  { %273 = vrot.lane.b32.xlu1 %v754_v26, %s855_s13 }
 0x684   :  { %v274_v27 = vpop.permute.xlu1 %273 }
 0x685   :  { %v276_v28 = vmul.f32 %v274_v27, %v254_v20 }
 0x687   :  { %v278_v30 = vrot.slane %v276_v28, 2  ;;  %v630_v31 = vsel %vm629_vm14, %v628_v29, %v276_v28  ;;  %vm635_vm14 = vcmask 1044480  }
 0x689   :  { %279 = vrot.lane.b32.xlu2 %v278_v30, %s856_s3 }
 0x6e3   :  { %v280_v32 = vpop.permute.xlu2 %279 }
 0x6e4   :  { %711 = vmatmul.msk.f32.vlgmr.msrb.gmra.mxu0 %vm49_vm0, %v280_v32 }
 0x761   :  { %v300_v33 = vpop.f32.mrf.mxu0 }
 0x762   :  { %v304_v34 = vrot.slane %v300_v33, 5 }
 0x764   :  { %v306_v35 = vadd.f32 %v304_v34, %v915_v13 }
 0x766   :  { %755 = vtanh.f32 %v306_v35  ;;  %v712_v38 = vmul.f32 -1.442695, %v306_v35 }
 0x768   :  { %757 = vpow2.f32 %v712_v38 }
 0x76c   :  { %v756_v37 = vpop.eup %755 }
 0x76d   :  { %332 = vrot.lane.b32.xlu0 %v756_v37, %s855_s13 }
 0x76e   :  { %v758_v39 = vpop.eup %757 }
 0x76f   :  { %v310_v40 = vadd.f32 1.0, %v758_v39 }
 0x771   :  { %759 = vrcp.f32 %v310_v40  ;;  %v322_v45 = vand.u32 2147483648, %v310_v40  ;;  %vm316_vm1 = vweird.f32 %v310_v40  ;;  %v320_v46 = vand.u32 2147483647, %v310_v40 }
 0x773   :  { %v323_v48 = vor.u32 1.1754944e-38, %v322_v45  ;;  %vm321_vm3 = vcmp.eq.f32.partialorder %v320_v46, 8.507059e+37 }
 0x777   :  { %v760_v36 = vpop.eup %759 }
 0x778   :  { %v312_v41 = vmul.f32 %v760_v36, %v310_v40  ;;  %vm317_vm15 = vweird.f32 %v760_v36 }
 0x779   :  { %vm318_vm2 = vmor %vm316_vm1, %vm317_vm15 }
 0x77a   :  { %v313_v42 = vsub.f32 1.0, %v312_v41 }
 0x77c   :  { %v314_v43 = vmul.f32 %v760_v36, %v313_v42 }
 0x77e   :  { %v315_v44 = vadd.f32 %v760_v36, %v314_v43 }
 0x780   :  { %v319_v47 = vsel %vm318_vm2, %v760_v36, %v315_v44 }
 0x781   :  { %v324_v50 = vsel %vm321_vm3, %v323_v48, %v319_v47 }
 0x782   :  { %v330_v53 = vmul.f32 %v328_v52, %v324_v50 }
 0x7df   :  { %v333_v49 = vpop.permute.xlu0 %332 }
 0x7e0   :  { %v335_v51 = vmul.f32 %v333_v49, %v324_v50 }
 0x7e2   :  { %337 = vrot.lane.b32.xlu1 %v335_v51, %s856_s3 }
 0x854   :  { %v338_v54 = vpop.permute.xlu1 %337 }
 0x855   :  { %v340_v55 = vadd.f32 %v338_v54, %v330_v53 }
 0x857   :  { %761 = vtanh.f32 %v340_v55  ;;  %v398_v18 = vrot.slane %v340_v55, 7 }
 0x85d   :  { %v762_v56 = vpop.eup %761 }
 0x85e   :  { %343 = vrot.lane.b32.xlu2 %v762_v56, %s855_s13 }
 0x8b8   :  { %v344_v57 = vpop.permute.xlu2 %343 }
 0x8b9   :  { %v346_v58 = vmul.f32 %v344_v57, %v324_v50 }
 0x8bb   :  { %v348_v59 = vrot.slane %v346_v58, 3  ;;  %v632_v60 = vsel %vm631_vm4, %v630_v31, %v346_v58  ;;  %vm637_vm4 = vcmask 1045504  }
 0x8bd   :  { %349 = vrot.lane.b32.xlu0 %v348_v59, %s856_s3 }
 0x92f   :  { %v350_v61 = vpop.permute.xlu0 %349 }
 0x930   :  { %713 = vmatmul.msk.f32.vlgmr.msrb.gmra.mxu1 %vm49_vm0, %v350_v61 }
 0x9ad   :  { %v370_v62 = vpop.f32.mrf.mxu1 }
 0x9ae   :  { %v374_v63 = vrot.slane %v370_v62, 4 }
 0x9b0   :  { %v376_v0 = vadd.f32 %v374_v63, %v915_v13 }
 0x9b2   :  { %763 = vtanh.f32 %v376_v0  ;;  %v714_v2 = vmul.f32 -1.442695, %v376_v0 }
 0x9b4   :  { %765 = vpow2.f32 %v714_v2 }
 0x9b8   :  { %v764_v1 = vpop.eup %763 }
 0x9b9   :  { %402 = vrot.lane.b32.xlu1 %v764_v1, %s855_s13 }
 0x9ba   :  { %v766_v3 = vpop.eup %765 }
 0x9bb   :  { %v380_v4 = vadd.f32 1.0, %v766_v3 }
 0x9bd   :  { %767 = vrcp.f32 %v380_v4  ;;  %v392_v10 = vand.u32 2147483648, %v380_v4  ;;  %vm386_vm6 = vweird.f32 %v380_v4  ;;  %v390_v11 = vand.u32 2147483647, %v380_v4 }
 0x9bf   :  { %v393_v14 = vor.u32 1.1754944e-38, %v392_v10  ;;  %vm391_vm8 = vcmp.eq.f32.partialorder %v390_v11, 8.507059e+37 }
 0x9c3   :  { %v768_v5 = vpop.eup %767 }
 0x9c4   :  { %v382_v6 = vmul.f32 %v768_v5, %v380_v4  ;;  %vm387_vm5 = vweird.f32 %v768_v5 }
 0x9c5   :  { %vm388_vm7 = vmor %vm386_vm6, %vm387_vm5 }
 0x9c6   :  { %v383_v7 = vsub.f32 1.0, %v382_v6 }
 0x9c8   :  { %v384_v8 = vmul.f32 %v768_v5, %v383_v7 }
 0x9ca   :  { %v385_v9 = vadd.f32 %v768_v5, %v384_v8 }
 0x9cc   :  { %v389_v12 = vsel %vm388_vm7, %v768_v5, %v385_v9 }
 0x9cd   :  { %v394_v16 = vsel %vm391_vm8, %v393_v14, %v389_v12 }
 0x9ce   :  { %v400_v19 = vmul.f32 %v398_v18, %v394_v16 }
 0xa2b   :  { %v403_v15 = vpop.permute.xlu1 %402 }
 0xa2c   :  { %v405_v17 = vmul.f32 %v403_v15, %v394_v16 }
 0xa2e   :  { %407 = vrot.lane.b32.xlu2 %v405_v17, %s856_s3 }
 0xa88   :  { %v408_v20 = vpop.permute.xlu2 %407 }
 0xa89   :  { %v410_v21 = vadd.f32 %v408_v20, %v400_v19 }
 0xa8b   :  { %769 = vtanh.f32 %v410_v21  ;;  %v468_v47 = vrot.slane %v410_v21, 7 }
 0xa91   :  { %v770_v22 = vpop.eup %769 }
 0xa92   :  { %413 = vrot.lane.b32.xlu0 %v770_v22, %s855_s13 }
 0xb04   :  { %v414_v23 = vpop.permute.xlu0 %413 }
 0xb05   :  { %v416_v24 = vmul.f32 %v414_v23, %v394_v16 }
 0xb07   :  { %v418_v25 = vrot.slane %v416_v24, 4  ;;  %v634_v26 = vsel %vm633_vm9, %v632_v60, %v416_v24  ;;  %vm639_vm9 = vcmask 1046528  }
 0xb09   :  { %419 = vrot.lane.b32.xlu1 %v418_v25, %s856_s3 }
 0xb7b   :  { %v420_v27 = vpop.permute.xlu1 %419 }
 0xb7c   :  { %715 = vmatmul.msk.f32.vlgmr.msrb.gmra.mxu2 %vm49_vm0, %v420_v27 }
 0xbff   :  { %v440_v28 = vpop.f32.mrf.mxu2 }
 0xc00   :  { %v444_v29 = vrot.slane %v440_v28, 3 }
 0xc02   :  { %v446_v30 = vadd.f32 %v444_v29, %v915_v13 }
 0xc04   :  { %771 = vtanh.f32 %v446_v30  ;;  %v716_v32 = vmul.f32 -1.442695, %v446_v30 }
 0xc06   :  { %773 = vpow2.f32 %v716_v32 }
 0xc0a   :  { %v772_v31 = vpop.eup %771 }
 0xc0b   :  { %472 = vrot.lane.b32.xlu2 %v772_v31, %s855_s13 }
 0xc0c   :  { %v774_v33 = vpop.eup %773 }
 0xc0d   :  { %v450_v34 = vadd.f32 1.0, %v774_v33 }
 0xc0f   :  { %775 = vrcp.f32 %v450_v34  ;;  %v462_v36 = vand.u32 2147483648, %v450_v34  ;;  %vm456_vm11 = vweird.f32 %v450_v34  ;;  %v460_v41 = vand.u32 2147483647, %v450_v34 }
 0xc11   :  { %v463_v43 = vor.u32 1.1754944e-38, %v462_v36  ;;  %vm461_vm13 = vcmp.eq.f32.partialorder %v460_v41, 8.507059e+37 }
 0xc15   :  { %v776_v35 = vpop.eup %775 }
 0xc16   :  { %v452_v37 = vmul.f32 %v776_v35, %v450_v34  ;;  %vm457_vm10 = vweird.f32 %v776_v35 }
 0xc17   :  { %vm458_vm12 = vmor %vm456_vm11, %vm457_vm10  ;;  %vm674_vm10 = vcmask 64512  }
 0xc18   :  { %v453_v38 = vsub.f32 1.0, %v452_v37 }
 0xc1a   :  { %v454_v39 = vmul.f32 %v776_v35, %v453_v38 }
 0xc1c   :  { %v455_v40 = vadd.f32 %v776_v35, %v454_v39 }
 0xc1e   :  { %v459_v42 = vsel %vm458_vm12, %v776_v35, %v455_v40 }
 0xc1f   :  { %v464_v45 = vsel %vm461_vm13, %v463_v43, %v459_v42 }
 0xc20   :  { %v470_v48 = vmul.f32 %v468_v47, %v464_v45  ;;  %v643_v47 = vld [vmem:[%s994_s4 + $0x10] sm:$0xff] }
 0xc65   :  { %v473_v44 = vpop.permute.xlu2 %472 }
 0xc66   :  { %v475_v46 = vmul.f32 %v473_v44, %v464_v45 }
 0xc68   :  { %477 = vrot.lane.b32.xlu0 %v475_v46, %s856_s3  ;;  %v644_v46 = vld [vmem:[%s994_s4 + $0x18] sm:$0xff] }
 0xc69   :  { %666 = vmatpush.msra.mxu1 %v644_v46 }
 0xc6b   :  { %667 = vmatpush.msra.mxu1 %v643_v47 }
 0xcda   :  { %v478_v49 = vpop.permute.xlu0 %477 }
 0xcdb   :  { %v480_v50 = vadd.f32 %v478_v49, %v470_v48  ;;  %v642_v48 = vld [vmem:[%s994_s4 + $0x8] sm:$0xff]  ;;  %v641_v49 = vld [vmem:[%s994_s4] sm:$0xff]  ;;  %s857_s4 = smov [#allocation5]  }
 0xcdc   :  { %668 = vmatpush.msra.mxu1 %v642_v48  ;;  %s693_s24 = sshll.u32 %s857_s4, 4  ;;  %s694_s24 = int_to_ptr.vmem [resolvable:$true] %s693_s24 }
 0xcdd   :  { %777 = vtanh.f32 %v480_v50  ;;  %v538_v12 = vrot.slane %v480_v50, 7 }
 0xcde   :  { %669 = vmatpush.msra.mxu1 %v641_v49 }
 0xce3   :  { %v778_v51 = vpop.eup %777 }
 0xce4   :  { %483 = vrot.lane.b32.xlu1 %v778_v51, %s855_s13 }
 0xd56   :  { %v484_v52 = vpop.permute.xlu1 %483 }
 0xd57   :  { %v486_v53 = vmul.f32 %v484_v52, %v464_v45 }
 0xd59   :  { %v488_v54 = vrot.slane %v486_v53, 5  ;;  %v636_v55 = vsel %vm635_vm14, %v634_v26, %v486_v53 }
 0xd5b   :  { %489 = vrot.lane.b32.xlu2 %v488_v54, %s856_s3  ;;  %v730_v54 = vld [vmem:[%s995_s5] ss:$0 sm:$0xff] }
 0xdb5   :  { %v490_v56 = vpop.permute.xlu2 %489 }
 0xdb6   :  { %717 = vmatmul.msk.f32.vlgmr.msrb.gmra.mxu3 %vm49_vm0, %v490_v56 }
 0xe39   :  { %v510_v57 = vpop.f32.mrf.mxu3 }
 0xe3a   :  { %v514_v58 = vrot.slane %v510_v57, 2 }
 0xe3c   :  { %v516_v59 = vadd.f32 %v514_v58, %v915_v13 }
 0xe3e   :  { %779 = vtanh.f32 %v516_v59  ;;  %v718_v61 = vmul.f32 -1.442695, %v516_v59 }
 0xe40   :  { %781 = vpow2.f32 %v718_v61 }
 0xe44   :  { %v780_v60 = vpop.eup %779 }
 0xe45   :  { %542 = vrot.lane.b32.xlu0 %v780_v60, %s855_s13 }
 0xe46   :  { %v782_v62 = vpop.eup %781 }
 0xe47   :  { %v520_v63 = vadd.f32 1.0, %v782_v62 }
 0xe49   :  { %783 = vrcp.f32 %v520_v63  ;;  %v532_v5 = vand.u32 2147483648, %v520_v63  ;;  %vm526_vm1 = vweird.f32 %v520_v63  ;;  %v530_v6 = vand.u32 2147483647, %v520_v63 }
 0xe4b   :  { %v533_v8 = vor.u32 1.1754944e-38, %v532_v5  ;;  %vm531_vm3 = vcmp.eq.f32.partialorder %v530_v6, 8.507059e+37 }
 0xe4f   :  { %v784_v0 = vpop.eup %783 }
 0xe50   :  { %v522_v1 = vmul.f32 %v784_v0, %v520_v63  ;;  %vm527_vm15 = vweird.f32 %v784_v0 }
 0xe51   :  { %vm528_vm2 = vmor %vm526_vm1, %vm527_vm15 }
 0xe52   :  { %v523_v2 = vsub.f32 1.0, %v522_v1 }
 0xe54   :  { %v524_v3 = vmul.f32 %v784_v0, %v523_v2 }
 0xe56   :  { %v525_v4 = vadd.f32 %v784_v0, %v524_v3 }
 0xe58   :  { %v529_v7 = vsel %vm528_vm2, %v784_v0, %v525_v4 }
 0xe59   :  { %v534_v10 = vsel %vm531_vm3, %v533_v8, %v529_v7 }
 0xe5a   :  { %v540_v14 = vmul.f32 %v538_v12, %v534_v10 }
 0xeb7   :  { %v543_v9 = vpop.permute.xlu0 %542 }
 0xeb8   :  { %v545_v11 = vmul.f32 %v543_v9, %v534_v10 }
 0xeba   :  { %547 = vrot.lane.b32.xlu1 %v545_v11, %s856_s3 }
 0xf2c   :  { %v548_v15 = vpop.permute.xlu1 %547 }
 0xf2d   :  { %v550_v16 = vadd.f32 %v548_v15, %v540_v14 }
 0xf2f   :  { %785 = vtanh.f32 %v550_v16  ;;  %v608_v41 = vrot.slane %v550_v16, 7 }
 0xf35   :  { %v786_v17 = vpop.eup %785 }
 0xf36   :  { %553 = vrot.lane.b32.xlu2 %v786_v17, %s855_s13 }
 0xf90   :  { %v554_v18 = vpop.permute.xlu2 %553 }
 0xf91   :  { %v556_v19 = vmul.f32 %v554_v18, %v534_v10 }
 0xf93   :  { %v558_v20 = vrot.slane %v556_v19, 6  ;;  %v638_v21 = vsel %vm637_vm4, %v636_v55, %v556_v19 }
 0xf95   :  { %559 = vrot.lane.b32.xlu0 %v558_v20, %s856_s3 }
0x1007   :  { %v560_v22 = vpop.permute.xlu0 %559 }
0x1008   :  { %719 = vmatmul.msk.f32.vlgmr.msra.gmra.mxu0 %vm49_vm0, %v560_v22 }
0x1085   :  { %v580_v23 = vpop.f32.mrf.mxu0 }
0x1086   :  { %v584_v24 = vrot.slane %v580_v23, 1 }
0x1088   :  { %v586_v25 = vadd.f32 %v584_v24, %v915_v13 }
0x108a   :  { %787 = vtanh.f32 %v586_v25  ;;  %v720_v27 = vmul.f32 -1.442695, %v586_v25 }
0x108c   :  { %789 = vpow2.f32 %v720_v27 }
0x1090   :  { %v788_v26 = vpop.eup %787 }
0x1091   :  { %612 = vrot.lane.b32.xlu1 %v788_v26, %s855_s13 }
0x1092   :  { %v790_v28 = vpop.eup %789 }
0x1093   :  { %v590_v29 = vadd.f32 1.0, %v790_v28 }
0x1095   :  { %791 = vrcp.f32 %v590_v29  ;;  %v602_v35 = vand.u32 2147483648, %v590_v29  ;;  %vm596_vm6 = vweird.f32 %v590_v29  ;;  %v600_v37 = vand.u32 2147483647, %v590_v29 }
0x1097   :  { %v603_v38 = vor.u32 1.1754944e-38, %v602_v35  ;;  %vm601_vm8 = vcmp.eq.f32.partialorder %v600_v37, 8.507059e+37 }
0x109b   :  { %v792_v30 = vpop.eup %791 }
0x109c   :  { %v592_v31 = vmul.f32 %v792_v30, %v590_v29  ;;  %vm597_vm5 = vweird.f32 %v792_v30 }
0x109d   :  { %vm598_vm7 = vmor %vm596_vm6, %vm597_vm5 }
0x109e   :  { %v593_v32 = vsub.f32 1.0, %v592_v31 }
0x10a0   :  { %v594_v33 = vmul.f32 %v792_v30, %v593_v32 }
0x10a2   :  { %v595_v34 = vadd.f32 %v792_v30, %v594_v33 }
0x10a4   :  { %v599_v13 = vsel %vm598_vm7, %v792_v30, %v595_v34 }
0x10a5   :  { %v604_v40 = vsel %vm601_vm8, %v603_v38, %v599_v13 }
0x10a6   :  { %v610_v42 = vmul.f32 %v608_v41, %v604_v40 }
0x1103   :  { %v613_v39 = vpop.permute.xlu1 %612 }
0x1104   :  { %v615_v36 = vmul.f32 %v613_v39, %v604_v40 }
0x1106   :  { %617 = vrot.lane.b32.xlu2 %v615_v36, %s856_s3 }
0x1160   :  { %v618_v43 = vpop.permute.xlu2 %617 }
0x1161   :  { %v620_v44 = vadd.f32 %v618_v43, %v610_v42 }
0x1163   :  { %793 = vtanh.f32 %v620_v44 }
0x1169   :  { %v794_v45 = vpop.eup %793 }
0x116a   :  { %623 = vrot.lane.b32.xlu0 %v794_v45, %s855_s13 }
0x11dc   :  { %v624_v50 = vpop.permute.xlu0 %623 }
0x11dd   :  { %v626_v51 = vmul.f32 %v624_v50, %v604_v40 }
0x11df   :  { %v640_v52 = vsel %vm639_vm9, %v638_v21, %v626_v51 }
0x11e0   :  { %650 = vrot.lane.b32.xlu1 %v640_v52, %s856_s3 }
0x1252   :  { %v651_v53 = vpop.permute.xlu1 %650 }
0x1253   :  { %721 = vmatmul.msk.f32.vlgmr.msra.gmra.mxu1 %vm49_vm0, %v651_v53 }
0x12d0   :  { %v671_v55 = vpop.f32.mrf.mxu1 }
0x12d1   :  { %v672_v56 = vadd.f32 %v730_v54, %v671_v55 }
0x12d3   :  { %v675_v57 = vsel %vm674_vm10, %v672_v56, -inf }
0x12d4   :  { %676 = vmax.xlane.f32.xlu2 %v675_v57 }
0x1347   :  { %v677_v58 = vpop.xlane.xlu2 %676 }
0x1348   :  { %v678_v59 = vsub.f32 %v672_v56, %v677_v58 }
0x134a   :  { %v679_v60 = vmul.f32 1.442695, %v678_v59 }
0x134c   :  { %795 = vpow2.f32 %v679_v60 }
0x1352   :  { %v796_v61 = vpop.eup %795 }
0x1353   :  { %v681_v62 = vsel %vm674_vm10, %v796_v61, 0.0 }
0x1354   :  { %682 = vadd.xlane.f32.xlu0 %v681_v62 }
0x13c7   :  { %v683_v63 = vpop.xlane.xlu0 %682 }
0x13c8   :  { %797 = vlog2.f32 %v683_v63 }
0x13ce   :  { %v798_v0 = vpop.eup %797 }
0x13cf   :  { %v685_v1 = vmul.f32 0.6931472, %v798_v0 }
0x13d1   :  { %v686_v2 = vsub.f32 %v678_v59, %v685_v1 }
0x13d3   :  { %687 = vst.msk [vmem:[#allocation5] sm:$0xff] %vm674_vm10, %v686_v2 }
0x13d4   :  { %698 = dma.vmem_to_hbm [thread:$0]  %s694_s24, 128, %s696_s26, [#allocation4]  }
0x13d5   :  { %849 = dma.done.wait [#allocation4], 128  }
0x13d6   :  { %850 = vsyncadd [#allocation4], 4294967168 }
0x13d7   :  { %703 = vsyncpa [#allocation3], 1 }
0x13d8   :  { %704 = vsyncpa [#allocation4], 1 }

</bundles_post_ra>
